<compile_context>
chip_gen: v7x
topology: tpu7x:2x2x1
jax: 0.10.0
libtpu: 0.0.40
codegen_flags: <defaults>
</compile_context>

<pallas_src>
import math

import jax
import jax.numpy as jnp
from jax.experimental import pallas as pl
from jax.experimental.pallas import tpu as pltpu


# ---------------------------------------------------------------------------
# Kernel
# ---------------------------------------------------------------------------
def _discriminator_kernel(xt_ref, at_ref, w1x_ref, w1a_ref, b1_ref,
                          w2_ref, b2_ref, w3_ref, b3_ref, out_ref):
    # fc1 on the (virtually) concatenated [x, a], feature-major:
    #   h1t[H, tb] = W1[:, :sd] @ x^T + W1[:, sd:] @ a^T + b1
    h1 = (jnp.dot(w1x_ref[...], xt_ref[...], preferred_element_type=jnp.float32)
          + jnp.dot(w1a_ref[...], at_ref[...], preferred_element_type=jnp.float32)
          + b1_ref[...])
    h1 = jnp.maximum(h1, 0.0)

    # fc2 + ReLU:  h2t[H, tb] = W2 @ h1t + b2   (bf16 operands, f32 accumulate)
    h2 = jnp.dot(w2_ref[...], h1.astype(jnp.bfloat16),
                 preferred_element_type=jnp.float32) + b2_ref[...]
    h2 = jnp.maximum(h2, 0.0)

    # fc4 + sigmoid:  [1, H] @ [H, tb] -> [1, tb]  (batch on lanes, dense store)
    logit = jnp.dot(w3_ref[...], h2.astype(jnp.bfloat16),
                    preferred_element_type=jnp.float32) + b3_ref[0, 0]
    out_ref[...] = jax.nn.sigmoid(logit).astype(out_ref.dtype)


# ---------------------------------------------------------------------------
# Helpers
# ---------------------------------------------------------------------------
def _round_up(x, m):
    return ((x + m - 1) // m) * m


def _padded_hidden(hidden_dim):
    # 128-aligned minimum (lane width / v5e MXU); 256-aligned beyond that
    # (v6e / v7x MXU tiles are 2 x 256 x 256).
    h = _round_up(hidden_dim, 128)
    return h if h <= 128 else _round_up(h, 256)


def _choose_tb(batch, block_b=1024):
    # Small batches: one full-extent block (block shape == array extent
    # satisfies the (8,128) layout rule; per-step overhead would dominate).
    if batch < 512:
        return batch
    # Large batches: guarantee >= 2 grid steps so the "parallel" axis can be
    # sharded across TensorCores (v7x megacore); tiles are multiples of 256
    # for full MXU occupancy on v6e / v7x (also multiples of 128 for v5e).
    n_steps = max(2, pl.cdiv(batch, block_b))
    tb = _round_up(pl.cdiv(batch, n_steps), 256)
    return min(tb, block_b)


# ---------------------------------------------------------------------------
# Wrapper
# ---------------------------------------------------------------------------
def discriminator_forward(x, a, params, *, block_b=1024):
    """x: [B, state_dim], a: [B, action_dim] -> [B, 1] sigmoid probabilities."""
    B, state_dim = x.shape
    action_dim = a.shape[1]
    h_pad = params["w2"].shape[0]

    tb = _choose_tb(B, block_b)
    n_blocks = pl.cdiv(B, tb)
    b_pad = n_blocks * tb

    # Feature-major inputs: batch on the lane axis, bf16 for the MXU.  The
    # transpose/pad of a [B, ~12] array is a negligible XLA op, and it removes
    # both the lane-sparse [tb, 12] tiles and any in-kernel transpose.
    xt = x.T.astype(jnp.bfloat16)
    at = a.T.astype(jnp.bfloat16)
    if b_pad != B:
        xt = jnp.pad(xt, ((0, 0), (0, b_pad - B)))
        at = jnp.pad(at, ((0, 0), (0, b_pad - B)))

    def const_spec(shape):
        return pl.BlockSpec(shape, lambda i: (0, 0))

    out = pl.pallas_call(
        _discriminator_kernel,
        out_shape=jax.ShapeDtypeStruct((1, b_pad), x.dtype),
        grid_spec=pltpu.PrefetchScalarGridSpec(
            num_scalar_prefetch=0,
            grid=(n_blocks,),
            in_specs=[
                pl.BlockSpec((state_dim, tb), lambda i: (0, i)),     # x^T
                pl.BlockSpec((action_dim, tb), lambda i: (0, i)),    # a^T
                const_spec((h_pad, state_dim)),                      # W1[:, :sd]
                const_spec((h_pad, action_dim)),                     # W1[:, sd:]
                const_spec((h_pad, 1)),                              # b1
                const_spec((h_pad, h_pad)),                          # W2
                const_spec((h_pad, 1)),                              # b2
                const_spec((1, h_pad)),                              # W4
                pl.BlockSpec(memory_space=pltpu.MemorySpace.SMEM),   # b4 scalar
            ],
            out_specs=pl.BlockSpec((1, tb), lambda i: (0, i)),
        ),
        compiler_params=pltpu.CompilerParams(
            dimension_semantics=("parallel",),
            vmem_limit_bytes=48 * 1024 * 1024,
        ),
    )(xt, at, params["w1x"], params["w1a"], params["b1"],
      params["w2"], params["b2"], params["w3"], params["b3"])

    # (1, B) -> (B, 1): identical row-major layout, free reshape.
    return out[:, :B].reshape(B, 1)


# ---------------------------------------------------------------------------
# Parameters
# ---------------------------------------------------------------------------
def init_params(key, state_dim, hidden_dim, action_dim):
    """PyTorch nn.Linear default init (uniform +-1/sqrt(fan_in)), [out, in] layout."""
    in1 = state_dim + action_dim
    k = jax.random.split(key, 6)

    def u(kk, shape, fan_in):
        bound = 1.0 / math.sqrt(float(fan_in))
        return jax.random.uniform(kk, shape, jnp.float32, -bound, bound)

    return {
        "w1": u(k[0], (hidden_dim, in1), in1),
        "b1": u(k[1], (hidden_dim,), in1),
        "w2": u(k[2], (hidden_dim, hidden_dim), hidden_dim),
        "b2": u(k[3], (hidden_dim,), hidden_dim),
        "w4": u(k[4], (1, hidden_dim), hidden_dim),
        "b4": u(k[5], (1,), hidden_dim),
    }


def prepare_kernel_params(raw, state_dim, hidden_dim, action_dim):
    """Pad hidden_dim to the MXU-friendly size, split fc1, cast weights to bf16."""
    h_pad = _padded_hidden(hidden_dim)
    p = h_pad - hidden_dim
    w1 = jnp.pad(raw["w1"], ((0, p), (0, 0)))
    return {
        "w1x": w1[:, :state_dim].astype(jnp.bfloat16),                       # [H, sd]
        "w1a": w1[:, state_dim:].astype(jnp.bfloat16),                       # [H, ad]
        "b1": jnp.pad(raw["b1"], (0, p)).reshape(h_pad, 1),                  # f32
        "w2": jnp.pad(raw["w2"], ((0, p), (0, p))).astype(jnp.bfloat16),     # [H, H]
        "b2": jnp.pad(raw["b2"], (0, p)).reshape(h_pad, 1),                  # f32
        "w3": jnp.pad(raw["w4"], ((0, 0), (0, p))).astype(jnp.bfloat16),     # [1, H]
        "b3": raw["b4"].reshape(1, 1),                                       # SMEM scalar
    }


def reference_forward(x, a, raw):
    """Pure-JAX reference of the PyTorch forward (explicit concat, f32)."""
    cat = jnp.concatenate([x, a], axis=1)
    h1 = jnp.maximum(cat @ raw["w1"].T + raw["b1"], 0.0)
    h2 = jnp.maximum(h1 @ raw["w2"].T + raw["b2"], 0.0)
    return jax.nn.sigmoid(h2 @ raw["w4"].T + raw["b4"])


# ---------------------------------------------------------------------------
# Self-test
# ---------------------------------------------------------------------------
if __name__ == "__main__":
    key = jax.random.PRNGKey(0)

    # Small config consistent with the module (single-block path).
    batch, state_dim, hidden_dim, action_dim = 4, 8, 32, 4
    kx, ka, kp, k2 = jax.random.split(key, 4)
    x = jax.random.normal(kx, (batch, state_dim), jnp.float32)
    a = jax.random.normal(ka, (batch, action_dim), jnp.float32)
    raw = init_params(kp, state_dim, hidden_dim, action_dim)
    params = prepare_kernel_params(raw, state_dim, hidden_dim, action_dim)

    out = jax.block_until_ready(discriminator_forward(x, a, params))
    ref = reference_forward(x, a, raw)
    assert out.shape == (batch, 1)
    assert jnp.allclose(out, ref, atol=2e-2, rtol=2e-2), (
        float(jnp.max(jnp.abs(out - ref))))

    # Larger config: exercises the multi-step batch-tiled grid (>=2 blocks for
    # megacore), the padded hidden dim, and a batch that is not a tile multiple.
    batch2, sd2, hd2, ad2 = 3000, 11, 200, 3
    kx2, ka2, kp2 = jax.random.split(k2, 3)
    x2 = jax.random.normal(kx2, (batch2, sd2), jnp.float32)
    a2 = jax.random.normal(ka2, (batch2, ad2), jnp.float32)
    raw2 = init_params(kp2, sd2, hd2, ad2)
    params2 = prepare_kernel_params(raw2, sd2, hd2, ad2)

    out2 = jax.block_until_ready(discriminator_forward(x2, a2, params2))
    ref2 = reference_forward(x2, a2, raw2)
    assert out2.shape == (batch2, 1)
    assert jnp.allclose(out2, ref2, atol=2e-2, rtol=2e-2), (
        float(jnp.max(jnp.abs(out2 - ref2))))

    print("KERNEL_OK")
</pallas_src>

<mosaic_0001>
module attributes {stable_mosaic.version = 11 : i64} {
  func.func @_discriminator_kernel(%arg0: i32, %arg1: memref<8x4xbf16, #tpu.memory_space<vmem>>, %arg2: memref<4x4xbf16, #tpu.memory_space<vmem>>, %arg3: memref<128x8xbf16, #tpu.memory_space<vmem>>, %arg4: memref<128x4xbf16, #tpu.memory_space<vmem>>, %arg5: memref<128x1xf32, #tpu.memory_space<vmem>>, %arg6: memref<128x128xbf16, #tpu.memory_space<vmem>>, %arg7: memref<128x1xf32, #tpu.memory_space<vmem>>, %arg8: memref<1x128xbf16, #tpu.memory_space<vmem>>, %arg9: memref<1x1xf32, #tpu.memory_space<smem>>, %arg10: memref<1x4xf32, #tpu.memory_space<vmem>>) attributes {dimension_semantics = [#tpu.dimension_semantics<parallel>], iteration_bounds = array<i64: 1>, scalar_prefetch = 0 : i64, scratch_operands = 0 : i64, tpu.core_type = #tpu.core_type<tc>, window_params = [{transform_indices = @transform_0, window_bounds = array<i64: 8, 4>}, {transform_indices = @transform_1, window_bounds = array<i64: 4, 4>}, {pipeline_mode = #tpu.pipeline_mode<synchronous>, transform_indices = @transform_2, window_bounds = array<i64: 128, 8>}, {pipeline_mode = #tpu.pipeline_mode<synchronous>, transform_indices = @transform_3, window_bounds = array<i64: 128, 4>}, {pipeline_mode = #tpu.pipeline_mode<synchronous>, transform_indices = @transform_4, window_bounds = array<i64: 128, 1>}, {pipeline_mode = #tpu.pipeline_mode<synchronous>, transform_indices = @transform_5, window_bounds = array<i64: 128, 128>}, {pipeline_mode = #tpu.pipeline_mode<synchronous>, transform_indices = @transform_6, window_bounds = array<i64: 128, 1>}, {pipeline_mode = #tpu.pipeline_mode<synchronous>, transform_indices = @transform_7, window_bounds = array<i64: 1, 128>}, {transform_indices = @transform_8, window_bounds = array<i64: 1, 1>}, {transform_indices = @transform_9, window_bounds = array<i64: 1, 4>}]} {
    %c0 = arith.constant 0 : index
    %c0_0 = arith.constant 0 : index
    %0 = vector.load %arg3[%c0, %c0_0] : memref<128x8xbf16, #tpu.memory_space<vmem>>, vector<128x8xbf16>
    %c0_1 = arith.constant 0 : index
    %c0_2 = arith.constant 0 : index
    %1 = vector.load %arg1[%c0_1, %c0_2] : memref<8x4xbf16, #tpu.memory_space<vmem>>, vector<8x4xbf16>
    %cst = arith.constant dense<0.000000e+00> : vector<128x4xf32>
    %2 = tpu.matmul %0, %1, %cst {dimension_numbers = #tpu.dot_dimension_numbers<[1], [0], [0], [1], [0, 0, 1, 1], [], []>} : vector<128x8xbf16>, vector<8x4xbf16>, vector<128x4xf32> -> vector<128x4xf32>
    %c0_3 = arith.constant 0 : index
    %c0_4 = arith.constant 0 : index
    %3 = vector.load %arg4[%c0_3, %c0_4] : memref<128x4xbf16, #tpu.memory_space<vmem>>, vector<128x4xbf16>
    %c0_5 = arith.constant 0 : index
    %c0_6 = arith.constant 0 : index
    %4 = vector.load %arg2[%c0_5, %c0_6] : memref<4x4xbf16, #tpu.memory_space<vmem>>, vector<4x4xbf16>
    %cst_7 = arith.constant dense<0.000000e+00> : vector<128x4xf32>
    %5 = tpu.matmul %3, %4, %cst_7 {dimension_numbers = #tpu.dot_dimension_numbers<[1], [0], [0], [1], [0, 0, 1, 1], [], []>} : vector<128x4xbf16>, vector<4x4xbf16>, vector<128x4xf32> -> vector<128x4xf32>
    %6 = arith.addf %2, %5 : vector<128x4xf32>
    %c0_8 = arith.constant 0 : index
    %c0_9 = arith.constant 0 : index
    %7 = vector.load %arg5[%c0_8, %c0_9] : memref<128x1xf32, #tpu.memory_space<vmem>>, vector<128x1xf32>
    %8 = vector.broadcast %7 : vector<128x1xf32> to vector<128x4xf32>
    %9 = arith.addf %6, %8 : vector<128x4xf32>
    %cst_10 = arith.constant 0.000000e+00 : f32
    %10 = vector.broadcast %cst_10 : f32 to vector<128x4xf32>
    %11 = arith.maximumf %9, %10 : vector<128x4xf32>
    %c0_11 = arith.constant 0 : index
    %c0_12 = arith.constant 0 : index
    %12 = vector.load %arg6[%c0_11, %c0_12] : memref<128x128xbf16, #tpu.memory_space<vmem>>, vector<128x128xbf16>
    %13 = arith.truncf %11 : vector<128x4xf32> to vector<128x4xbf16>
    %cst_13 = arith.constant dense<0.000000e+00> : vector<128x4xf32>
    %14 = tpu.matmul %12, %13, %cst_13 {dimension_numbers = #tpu.dot_dimension_numbers<[1], [0], [0], [1], [0, 0, 1, 1], [], []>} : vector<128x128xbf16>, vector<128x4xbf16>, vector<128x4xf32> -> vector<128x4xf32>
    %c0_14 = arith.constant 0 : index
    %c0_15 = arith.constant 0 : index
    %15 = vector.load %arg7[%c0_14, %c0_15] : memref<128x1xf32, #tpu.memory_space<vmem>>, vector<128x1xf32>
    %16 = vector.broadcast %15 : vector<128x1xf32> to vector<128x4xf32>
    %17 = arith.addf %14, %16 : vector<128x4xf32>
    %cst_16 = arith.constant 0.000000e+00 : f32
    %18 = vector.broadcast %cst_16 : f32 to vector<128x4xf32>
    %19 = arith.maximumf %17, %18 : vector<128x4xf32>
    %c0_17 = arith.constant 0 : index
    %c0_18 = arith.constant 0 : index
    %20 = vector.load %arg8[%c0_17, %c0_18] : memref<1x128xbf16, #tpu.memory_space<vmem>>, vector<1x128xbf16>
    %21 = arith.truncf %19 : vector<128x4xf32> to vector<128x4xbf16>
    %cst_19 = arith.constant dense<0.000000e+00> : vector<1x4xf32>
    %22 = tpu.matmul %20, %21, %cst_19 {dimension_numbers = #tpu.dot_dimension_numbers<[1], [0], [0], [1], [0, 0, 1, 1], [], []>} : vector<1x128xbf16>, vector<128x4xbf16>, vector<1x4xf32> -> vector<1x4xf32>
    %c0_20 = arith.constant 0 : index
    %c0_21 = arith.constant 0 : index
    %23 = memref.load %arg9[%c0_20, %c0_21] : memref<1x1xf32, #tpu.memory_space<smem>>
    %24 = vector.broadcast %23 : f32 to vector<1x4xf32>
    %25 = arith.addf %22, %24 : vector<1x4xf32>
    %26 = arith.negf %25 : vector<1x4xf32>
    %27 = math.exp %26 : vector<1x4xf32>
    %cst_22 = arith.constant 1.000000e+00 : f32
    %28 = vector.broadcast %cst_22 : f32 to vector<1x4xf32>
    %29 = arith.addf %28, %27 : vector<1x4xf32>
    %30 = arith.divf %28, %29 : vector<1x4xf32>
    %c0_23 = arith.constant 0 : index
    %c0_24 = arith.constant 0 : index
    %31 = vector.load %arg10[%c0_23, %c0_24] : memref<1x4xf32, #tpu.memory_space<vmem>>, vector<1x4xf32>
    tpu.vector_store %arg10[%c0_23, %c0_24], %30 {strides = array<i32>} : memref<1x4xf32, #tpu.memory_space<vmem>>, vector<1x4xf32>,
    return
  }
  func.func @transform_0(%arg0: i32) -> (i32, i32) {
    %c0_i32 = arith.constant 0 : i32
    %c0_i32_0 = arith.constant 0 : i32
    return %c0_i32, %arg0 : i32, i32
  }
  func.func @transform_1(%arg0: i32) -> (i32, i32) {
    %c0_i32 = arith.constant 0 : i32
    %c0_i32_0 = arith.constant 0 : i32
    return %c0_i32, %arg0 : i32, i32
  }
  func.func @transform_2(%arg0: i32) -> (i32, i32) {
    %c0_i32 = arith.constant 0 : i32
    %c0_i32_0 = arith.constant 0 : i32
    %c0_i32_1 = arith.constant 0 : i32
    return %c0_i32, %c0_i32_0 : i32, i32
  }
  func.func @transform_3(%arg0: i32) -> (i32, i32) {
    %c0_i32 = arith.constant 0 : i32
    %c0_i32_0 = arith.constant 0 : i32
    %c0_i32_1 = arith.constant 0 : i32
    return %c0_i32, %c0_i32_0 : i32, i32
  }
  func.func @transform_4(%arg0: i32) -> (i32, i32) {
    %c0_i32 = arith.constant 0 : i32
    %c0_i32_0 = arith.constant 0 : i32
    %c0_i32_1 = arith.constant 0 : i32
    return %c0_i32, %c0_i32_0 : i32, i32
  }
  func.func @transform_5(%arg0: i32) -> (i32, i32) {
    %c0_i32 = arith.constant 0 : i32
    %c0_i32_0 = arith.constant 0 : i32
    %c0_i32_1 = arith.constant 0 : i32
    return %c0_i32, %c0_i32_0 : i32, i32
  }
  func.func @transform_6(%arg0: i32) -> (i32, i32) {
    %c0_i32 = arith.constant 0 : i32
    %c0_i32_0 = arith.constant 0 : i32
    %c0_i32_1 = arith.constant 0 : i32
    return %c0_i32, %c0_i32_0 : i32, i32
  }
  func.func @transform_7(%arg0: i32) -> (i32, i32) {
    %c0_i32 = arith.constant 0 : i32
    %c0_i32_0 = arith.constant 0 : i32
    %c0_i32_1 = arith.constant 0 : i32
    return %c0_i32, %c0_i32_0 : i32, i32
  }
  func.func @transform_8(%arg0: i32) -> (i32, i32) {
    %c0_i32 = arith.constant 0 : i32
    %c0_i32_0 = arith.constant 0 : i32
    %c0_i32_1 = arith.constant 0 : i32
    return %c0_i32, %c0_i32_0 : i32, i32
  }
  func.func @transform_9(%arg0: i32) -> (i32, i32) {
    %c0_i32 = arith.constant 0 : i32
    %c0_i32_0 = arith.constant 0 : i32
    return %c0_i32, %arg0 : i32, i32
  }
}

</mosaic_0001>

<bundles_post_ra>
// kernel: tpu_custom_call.1
= control target key start
LH: loop header
LB: loop body
LE: loop exit
PB: predicated region body
PF: predicated region fallthrough
CT: control target
= control target key end

     0   :  { %vm134_vm0 = vcmask 1041408   ;;  %vm109_vm1 = vcmask 31744   ;;  %vm300_vm2 = vcmask 1043456   ;;  %v1131_v7 = vmov 0   ;;  %s1402_s0 = inlined_call_operand.vmem [shape: bf16[8,4], index: 0, kind: input, shape index: {}]   ;;  %s1403_s1 = inlined_call_operand.vmem [shape: bf16[4,4], index: 1, kind: input, shape index: {}]   ;;  %s1404_s2 = inlined_call_operand.vmem [shape: bf16[128,8], index: 2, kind: input, shape index: {}]   ;;  %s1405_s3 = inlined_call_operand.vmem [shape: bf16[128,4], index: 3, kind: input, shape index: {}]   ;;  %s1406_s4 = inlined_call_operand.vmem [shape: f32[128,1], index: 4, kind: input, shape index: {}]   ;;  %s1407_s5 = inlined_call_operand.vmem [shape: bf16[128,128], index: 5, kind: input, shape index: {}]   ;;  %s1408_s6 = inlined_call_operand.vmem [shape: f32[128,1], index: 6, kind: input, shape index: {}]   ;;  %s1409_s7 = inlined_call_operand.vmem [shape: bf16[1,128], index: 7, kind: input, shape index: {}]   ;;  %s1410_s8 = inlined_call_operand.<no memory space> [shape: f32[1,1], index: 8, kind: input, shape index: {}]   ;;  %s1411_s9 = inlined_call_operand.hbm [shape: f32[1,4], index: 9, kind: output, shape index: {}]  }
   0x1   :  { %v68_v0 = vld [vmem:[%s1403_s1] sm:$0x3]  ;;  %v1080_v3 = vld [vmem:[%s1405_s3 + $0x8] sm:$0xff]   ;;  %v1081_v6 = vld [vmem:[%s1405_s3 + $0x10] sm:$0xff]   ;;  %1077 = vset.pattern.permute.xlu0 %v1131_v7  ;;  %1078 = vset.pattern.permute.xlu1 %v1131_v7  ;;  %vm275_vm3 = vcmask 64512  }
   0x2   :  { %v1079_v1 = vld [vmem:[%s1405_s3] sm:$0xff]   ;;  %1071 = vmatprep.subr.msk.bf16.mxu0 %vm134_vm0, %v68_v0  ;;  %v136_v2 = vsel %vm134_vm0, %v68_v0, 0  ;;  %v1082_v8 = vld [vmem:[%s1405_s3 + $0x18] sm:$0xff]   ;;  %v1084_v11 = vld [vmem:[%s1405_s3 + $0x28] sm:$0xff]  }
   0x3   :  { %968 = vmatpush3.bf16.msra.mxu0 %v136_v2  ;;  %969 = vmatprep.mubr.msk.bf16.mxu0 %vm109_vm1, %v1079_v1  ;;  %v51_v4 = vld [vmem:[%s1402_s0] sm:$0xf]  ;;  %v403_v12 = vld [vmem:[%s1406_s4 + $0x10] sm:$0xff]  ;;  %v402_v13 = vld [vmem:[%s1406_s4 + $0x8] sm:$0xff] }
   0x4   :  { %1072 = vmatprep.subr.msk.bf16.mxu0 %vm300_vm2, %v51_v4  ;;  %v302_v5 = vsel %vm300_vm2, %v51_v4, 0  ;;  %v1083_v9 = vld [vmem:[%s1405_s3 + $0x20] sm:$0xff]   ;;  %v1085_v14 = vld [vmem:[%s1405_s3 + $0x30] sm:$0xff]   ;;  %429 = vperm.xlu1 %1078, %v403_v12   ;;  %v404_v15 = vld [vmem:[%s1406_s4 + $0x18] sm:$0xff] }
   0x5   :  { %v401_v10 = vld [vmem:[%s1406_s4] sm:$0xff]  ;;  %v406_v17 = vld [vmem:[%s1406_s4 + $0x28] sm:$0xff]  ;;  %v1086_v18 = vld [vmem:[%s1405_s3 + $0x38] sm:$0xff]  }
   0x6   :  { %970 = vmatmul.mubr.msk.bf16.vlgmr.msra.gmra.mrb[0].mxu0 %vm109_vm1, %v1080_v3  ;;  %419 = vperm.xlu0 %1077, %v401_v10   ;;  %v405_v16 = vld [vmem:[%s1406_s4 + $0x20] sm:$0xff]  ;;  %v407_v19 = vld [vmem:[%s1406_s4 + $0x30] sm:$0xff]  ;;  %v408_v21 = vld [vmem:[%s1406_s4 + $0x38] sm:$0xff] }
   0x7   :  { %986 = vmatpush3.bf16.msra.mxu0 %v302_v5  ;;  %973 = vmatprep.mubr.msk.bf16.mxu0 %vm109_vm1, %v1081_v6  ;;  %v1087_v20 = vld [vmem:[%s1404_s2] sm:$0xff]   ;;  %v410_v23 = vld [vmem:[%s1406_s4 + $0x48] sm:$0xff]  ;;  %v411_v25 = vld [vmem:[%s1406_s4 + $0x50] sm:$0xff] }
   0x8   :  { %434 = vperm.xlu1 %1078, %v404_v15   ;;  %v409_v22 = vld [vmem:[%s1406_s4 + $0x40] sm:$0xff]  ;;  %v1088_v24 = vld [vmem:[%s1404_s2 + $0x8] sm:$0xff]  }
   0xa   :  { %424 = vperm.xlu0 %1077, %v402_v13  }
   0xc   :  { %444 = vperm.xlu1 %1078, %v406_v17  }
   0xe   :  { %974 = vmatmul.mubr.msk.bf16.gmra.mrb[4].mxu0 %vm109_vm1, %v1082_v8  ;;  %439 = vperm.xlu0 %1077, %v405_v16  }
   0xf   :  { %977 = vmatprep.mubr.msk.bf16.mxu0 %vm109_vm1, %v1083_v9 }
  0x10   :  { %454 = vperm.xlu1 %1078, %v408_v21  }
  0x12   :  { %449 = vperm.xlu0 %1077, %v407_v19  }
  0x16   :  { %978 = vmatmul.mubr.msk.bf16.gmra.mrb[8].mxu0 %vm109_vm1, %v1084_v11  ;;  %459 = vperm.xlu0 %1077, %v409_v22  }
  0x17   :  { %981 = vmatprep.mubr.msk.bf16.mxu0 %vm109_vm1, %v1085_v14 }
  0x1e   :  { %982 = vmatmul.mubr.msk.bf16.gmra.mrb[12].mxu0 %vm109_vm1, %v1086_v18 }
  0x1f   :  { %987 = vmatprep.mubr.msk.bf16.mxu0 %vm275_vm3, %v1087_v20 }
  0x20   :  { %15 = vsyncpa [#allocation4], 0  ;;  %v1089_v26 = vld [vmem:[%s1404_s2 + $0x10] sm:$0xff]   ;;  %464 = vperm.xlu1 %1078, %v410_v23   ;;  %v412_v27 = vld [vmem:[%s1406_s4 + $0x58] sm:$0xff]  ;;  %469 = vperm.xlu0 %1077, %v411_v25   ;;  %vm1133_vm4 = vmmov 0   ;;  %s1134_s25 = smov [#allocation3]  }
  0x21   :  { %v413_v28 = vld [vmem:[%s1406_s4 + $0x60] sm:$0xff]  ;;  %v414_v29 = vld [vmem:[%s1406_s4 + $0x68] sm:$0xff]  ;;  %v1090_v30 = vld [vmem:[%s1404_s2 + $0x18] sm:$0xff]   ;;  %s875_s26 = sshll.u32 %s1134_s25, 4  ;;  %vm867_vm5 = vcmask 24576   ;;  %s876_s26 = int_to_ptr.vmem [resolvable:$true] %s875_s26 }
  0x22   :  { %v415_v31 = vld [vmem:[%s1406_s4 + $0x70] sm:$0xff]  ;;  %v1091_v32 = vld [vmem:[%s1404_s2 + $0x20] sm:$0xff]   ;;  %v416_v33 = vld [vmem:[%s1406_s4 + $0x78] sm:$0xff]  ;;  %s1111_s4 = scalar_lea.vmem %s876_s26, 32  ;;  %p1112_p1 = scmp.lt.s32.totalorder %s876_s26, %s876_s26 }
  0x23   :  { %v553_v34 = vld [vmem:[%s1408_s6] sm:$0xff]  ;;  %v554_v35 = vld [vmem:[%s1408_s6 + $0x8] sm:$0xff]  ;;  %v555_v37 = vld [vmem:[%s1408_s6 + $0x10] sm:$0xff] }
  0x24   :  { %474 = vperm.xlu1 %1078, %v412_v27   ;;  %479 = vperm.xlu0 %1077, %v413_v28   ;;  %v1092_v36 = vld [vmem:[%s1404_s2 + $0x28] sm:$0xff]   ;;  %v1093_v38 = vld [vmem:[%s1404_s2 + $0x30] sm:$0xff]   ;;  %v556_v39 = vld [vmem:[%s1408_s6 + $0x18] sm:$0xff] }
  0x25   :  { %v557_v40 = vld [vmem:[%s1408_s6 + $0x20] sm:$0xff]  ;;  %v558_v41 = vld [vmem:[%s1408_s6 + $0x28] sm:$0xff]  ;;  %v1094_v42 = vld [vmem:[%s1404_s2 + $0x38] sm:$0xff]  }
  0x26   :  { %988 = vmatmul.mubr.msk.bf16.vlgmr.msra.gmra.mrb[0].mxu0 %vm275_vm3, %v1088_v24  ;;  %v559_v43 = vld [vmem:[%s1408_s6 + $0x30] sm:$0xff]  ;;  %v560_v44 = vld [vmem:[%s1408_s6 + $0x38] sm:$0xff]  ;;  %v561_v45 = vld [vmem:[%s1408_s6 + $0x40] sm:$0xff] }
  0x27   :  { %991 = vmatprep.mubr.msk.bf16.mxu0 %vm275_vm3, %v1089_v26  ;;  %v562_v46 = vld [vmem:[%s1408_s6 + $0x48] sm:$0xff]  ;;  %v563_v47 = vld [vmem:[%s1408_s6 + $0x50] sm:$0xff]  ;;  %v564_v48 = vld [vmem:[%s1408_s6 + $0x58] sm:$0xff] }
  0x28   :  { %484 = vperm.xlu1 %1078, %v414_v29   ;;  %489 = vperm.xlu0 %1077, %v415_v31   ;;  %v565_v49 = vld [vmem:[%s1408_s6 + $0x60] sm:$0xff]  ;;  %v566_v50 = vld [vmem:[%s1408_s6 + $0x68] sm:$0xff]  ;;  %v567_v51 = vld [vmem:[%s1408_s6 + $0x70] sm:$0xff] }
  0x29   :  { %v568_v52 = vld [vmem:[%s1408_s6 + $0x78] sm:$0xff]  ;;  %v1095_v53 = vld [vmem:[%s1407_s5] sm:$0xff]  }
  0x2a   :  { %1019 = vmatprep.mubr.bf16.mxu1 %v1095_v53 }
  0x2c   :  { %494 = vperm.xlu1 %1078, %v416_v33   ;;  %571 = vperm.xlu0 %1077, %v553_v34  }
  0x2e   :  { %992 = vmatmul.mubr.msk.bf16.gmra.mrb[4].mxu0 %vm275_vm3, %v1090_v30 }
  0x2f   :  { %995 = vmatprep.mubr.msk.bf16.mxu0 %vm275_vm3, %v1091_v32 }
  0x30   :  { %576 = vperm.xlu1 %1078, %v554_v35   ;;  %581 = vperm.xlu0 %1077, %v555_v37  }
  0x34   :  { %586 = vperm.xlu1 %1078, %v556_v39   ;;  %591 = vperm.xlu0 %1077, %v557_v40  }
  0x36   :  { %996 = vmatmul.mubr.msk.bf16.gmra.mrb[8].mxu0 %vm275_vm3, %v1092_v36 }
  0x37   :  { %999 = vmatprep.mubr.msk.bf16.mxu0 %vm275_vm3, %v1093_v38 }
  0x38   :  { %596 = vperm.xlu1 %1078, %v558_v41   ;;  %601 = vperm.xlu0 %1077, %v559_v43  }
  0x3c   :  { %606 = vperm.xlu1 %1078, %v560_v44   ;;  %611 = vperm.xlu0 %1077, %v561_v45  }
  0x3e   :  { %1000 = vmatmul.mubr.msk.bf16.gmra.mrb[12].mxu0 %vm275_vm3, %v1094_v42 }
  0x40   :  { %616 = vperm.xlu1 %1078, %v562_v46   ;;  %621 = vperm.xlu0 %1077, %v563_v47  }
  0x44   :  { %626 = vperm.xlu1 %1078, %v564_v48   ;;  %631 = vperm.xlu0 %1077, %v565_v49  }
  0x48   :  { %636 = vperm.xlu1 %1078, %v566_v50   ;;  %641 = vperm.xlu0 %1077, %v567_v51  }
  0x4c   :  { %646 = vperm.xlu1 %1078, %v568_v52  }
  0x83   :  { %v430_v55 = vpop.permute.xlu1 %429 }
  0x85   :  { %v420_v54 = vpop.permute.xlu0 %419 }
  0x87   :  { %v435_v57 = vpop.permute.xlu1 %434 }
  0x89   :  { %v425_v56 = vpop.permute.xlu0 %424 }
  0x8b   :  { %v445_v59 = vpop.permute.xlu1 %444 }
  0x8d   :  { %v440_v58 = vpop.permute.xlu0 %439 }
  0x8f   :  { %v455_v0 = vpop.permute.xlu1 %454 }
  0x91   :  { %v450_v60 = vpop.permute.xlu0 %449 }
  0x95   :  { %v460_v8 = vpop.permute.xlu0 %459 }
  0x9f   :  { %v465_v12 = vpop.permute.xlu1 %464  ;;  %v470_v21 = vpop.permute.xlu0 %469 }
  0xa3   :  { %v475_v25 = vpop.permute.xlu1 %474  ;;  %v480_v33 = vpop.permute.xlu0 %479 }
  0xa7   :  { %v485_v38 = vpop.permute.xlu1 %484  ;;  %v490_v45 = vpop.permute.xlu0 %489 }
  0xab   :  { %v495_v50 = vpop.permute.xlu1 %494 }
  0xf9   :  { %v989_v61 = vpop.f32.mrb[0].mxu0 }
  0xfa   :  { %v499_v62 = vadd.f32 %v989_v61, %v430_v55  ;;  %v338_v63 = vpop.f32.mrb[1].mxu0 }
  0xfb   :  { %v497_v1 = vadd.f32 %v420_v54, %v338_v63  ;;  %v990_v2 = vpop.f32.mrb[2].mxu0  ;;  %v1097_v63 = vld [vmem:[%s1407_s5 + $0x10] sm:$0xff]  }
  0xfc   :  { %v500_v3 = vadd.f32 %v990_v2, %v435_v57  ;;  %v341_v4 = vpop.f32.mrb[3].mxu0  ;;  %v515_v6 = vmax.f32 %v499_v62, 0.0  ;;  %v1096_v62 = vld [vmem:[%s1407_s5 + $0x8] sm:$0xff]  }
  0xfd   :  { %v498_v5 = vadd.f32 %v425_v56, %v341_v4  ;;  %v513_v9 = vmax.f32 %v497_v1, 0.0  ;;  %v1099_v1 = vld [vmem:[%s1407_s5 + $0x20] sm:$0xff]   ;;  %v1100_v2 = vld [vmem:[%s1407_s5 + $0x28] sm:$0xff]   ;;  %v1102_v4 = vld [vmem:[%s1407_s5 + $0x38] sm:$0xff]  }
  0xfe   :  { %v516_v7 = vmax.f32 %v500_v3, 0.0  ;;  %v1101_v3 = vld [vmem:[%s1407_s5 + $0x30] sm:$0xff]  }
  0xff   :  { %v514_v10 = vmax.f32 %v498_v5, 0.0  ;;  %v1132_v5 = vmov 0.0  }
 0x100   :  { %v546_v11 = vpack.c.bf16 %v516_v7, %v515_v6  ;;  %v572_v6 = vpop.permute.xlu0 %571  ;;  %v577_v7 = vpop.permute.xlu1 %576 }
 0x101   :  { %v993_v13 = vpop.f32.mrb[4].mxu0  ;;  %v545_v14 = vpack.c.bf16 %v514_v10, %v513_v9 }
 0x102   :  { %v503_v15 = vadd.f32 %v993_v13, %v450_v60  ;;  %v354_v16 = vpop.f32.mrb[5].mxu0 }
 0x103   :  { %v501_v17 = vadd.f32 %v440_v58, %v354_v16  ;;  %v994_v18 = vpop.f32.mrb[6].mxu0  ;;  %1003 = vmatprep.subr.bf16.mxu1 %v545_v14 }
 0x104   :  { %v504_v19 = vadd.f32 %v994_v18, %v455_v0  ;;  %v357_v20 = vpop.f32.mrb[7].mxu0  ;;  %1004 = vmatpush3.bf16.msra.mxu1 %v545_v14  ;;  %v519_v23 = vmax.f32 %v503_v15, 0.0  ;;  %v1098_v0 = vld [vmem:[%s1407_s5 + $0x18] sm:$0xff]   ;;  %v587_v9 = vpop.permute.xlu1 %586 }
 0x105   :  { %v502_v22 = vadd.f32 %v445_v59, %v357_v20  ;;  %1005 = vmatprep.subr.bf16.mxu1 %v546_v11  ;;  %v517_v26 = vmax.f32 %v501_v17, 0.0 }
 0x106   :  { %v520_v24 = vmax.f32 %v504_v19, 0.0 }
 0x107   :  { %v518_v27 = vmax.f32 %v502_v22, 0.0 }
 0x108   :  { %v548_v28 = vpack.c.bf16 %v520_v24, %v519_v23  ;;  %1006 = vmatpush3.bf16.msra.mxu1 %v546_v11  ;;  %v597_v11 = vpop.permute.xlu1 %596 }
 0x109   :  { %v547_v29 = vpack.c.bf16 %v518_v27, %v517_v26  ;;  %v997_v30 = vpop.f32.mrb[8].mxu0 }
 0x10a   :  { %v507_v31 = vadd.f32 %v997_v30, %v470_v21  ;;  %v370_v32 = vpop.f32.mrb[9].mxu0 }
 0x10b   :  { %v505_v34 = vadd.f32 %v460_v8, %v370_v32  ;;  %v998_v35 = vpop.f32.mrb[10].mxu0  ;;  %1007 = vmatprep.subr.bf16.mxu1 %v547_v29  ;;  %v582_v8 = vpop.permute.xlu0 %581 }
 0x10c   :  { %v508_v36 = vadd.f32 %v998_v35, %v475_v25  ;;  %v373_v37 = vpop.f32.mrb[11].mxu0  ;;  %1008 = vmatpush3.bf16.msra.mxu1 %v547_v29  ;;  %v523_v40 = vmax.f32 %v507_v31, 0.0  ;;  %v607_v16 = vpop.permute.xlu1 %606 }
 0x10d   :  { %v506_v39 = vadd.f32 %v465_v12, %v373_v37  ;;  %1009 = vmatprep.subr.bf16.mxu1 %v548_v28  ;;  %v521_v42 = vmax.f32 %v505_v34, 0.0 }
 0x10e   :  { %v524_v41 = vmax.f32 %v508_v36, 0.0 }
 0x10f   :  { %v522_v43 = vmax.f32 %v506_v39, 0.0  ;;  %v592_v10 = vpop.permute.xlu0 %591 }
 0x110   :  { %v550_v44 = vpack.c.bf16 %v524_v41, %v523_v40  ;;  %1010 = vmatpush3.bf16.msra.mxu1 %v548_v28  ;;  %v617_v28 = vpop.permute.xlu1 %616 }
 0x111   :  { %v549_v46 = vpack.c.bf16 %v522_v43, %v521_v42  ;;  %v1001_v47 = vpop.f32.mrb[12].mxu0 }
 0x112   :  { %v511_v48 = vadd.f32 %v1001_v47, %v490_v45  ;;  %v386_v49 = vpop.f32.mrb[13].mxu0 }
 0x113   :  { %v509_v51 = vadd.f32 %v480_v33, %v386_v49  ;;  %v1002_v52 = vpop.f32.mrb[14].mxu0  ;;  %1011 = vmatprep.subr.bf16.mxu1 %v549_v46  ;;  %v602_v12 = vpop.permute.xlu0 %601 }
 0x114   :  { %v512_v53 = vadd.f32 %v1002_v52, %v495_v50  ;;  %v389_v54 = vpop.f32.mrb[15].mxu0  ;;  %1012 = vmatpush3.bf16.msra.mxu1 %v549_v46  ;;  %v527_v56 = vmax.f32 %v511_v48, 0.0  ;;  %v627_v41 = vpop.permute.xlu1 %626 }
 0x115   :  { %v510_v55 = vadd.f32 %v485_v38, %v389_v54  ;;  %1013 = vmatprep.subr.bf16.mxu1 %v550_v44  ;;  %v525_v58 = vmax.f32 %v509_v51, 0.0 }
 0x116   :  { %v528_v57 = vmax.f32 %v512_v53, 0.0 }
 0x117   :  { %v526_v59 = vmax.f32 %v510_v55, 0.0  ;;  %v612_v24 = vpop.permute.xlu0 %611 }
 0x118   :  { %v552_v60 = vpack.c.bf16 %v528_v57, %v527_v56  ;;  %1014 = vmatpush3.bf16.msra.mxu1 %v550_v44  ;;  %v637_v54 = vpop.permute.xlu1 %636 }
 0x119   :  { %v551_v61 = vpack.c.bf16 %v526_v59, %v525_v58 }
 0x11b   :  { %1015 = vmatprep.subr.bf16.mxu1 %v551_v61  ;;  %v622_v37 = vpop.permute.xlu0 %621 }
 0x11c   :  { %1016 = vmatpush3.bf16.msra.mxu1 %v551_v61 }
 0x11d   :  { %1017 = vmatprep.subr.bf16.mxu1 %v552_v60 }
 0x11f   :  { %v632_v49 = vpop.permute.xlu0 %631 }
 0x120   :  { %1018 = vmatpush3.bf16.msra.mxu1 %v552_v60 }
 0x121   :  { %1035 = vmatprep.subr.bf16.mxu1 %v1132_v5 }
 0x123   :  { %1020 = vmatmul.mubr.bf16.vlgmr.msra.gmra.mrb[0].mxu1 %v1096_v62  ;;  %v642_v61 = vpop.permute.xlu0 %641 }
 0x124   :  { %1023 = vmatprep.mubr.bf16.mxu1 %v1097_v63 }
 0x12b   :  { %1024 = vmatmul.mubr.bf16.gmra.mrb[4].mxu1 %v1098_v0 }
 0x12c   :  { %1027 = vmatprep.mubr.bf16.mxu1 %v1099_v1 }
 0x133   :  { %1028 = vmatmul.mubr.bf16.gmra.mrb[8].mxu1 %v1100_v2  ;;  %v647_v2 = vpop.permute.xlu1 %646 }
 0x134   :  { %1031 = vmatprep.mubr.bf16.mxu1 %v1101_v3 }
 0x13b   :  { %1032 = vmatmul.mubr.bf16.gmra.mrb[12].mxu1 %v1102_v4 }
 0x13c   :  { %1051 = vmatprep.mubr.msk.bf16.mxu1 %vm1133_vm4, %v1132_v5 }
 0x1f6   :  { %v1021_v13 = vpop.f32.mrb[0].mxu1 }
 0x1f7   :  { %v740_v14 = vadd.f32 %v1021_v13, %v582_v8  ;;  %v731_v15 = vpop.f32.mrb[1].mxu1 }
 0x1f8   :  { %v732_v17 = vadd.f32 %v731_v15, %v572_v6  ;;  %v1022_v18 = vpop.f32.mrb[2].mxu1  ;;  %v810_v15 = vld [vmem:[%s1409_s7] sm:$0x1]  ;;  %s1107_s7 = scalar_lea.vmem %s876_s26, 16 }
 0x1f9   :  { %v743_v19 = vadd.f32 %v1022_v18, %v587_v9  ;;  %v734_v20 = vpop.f32.mrb[3].mxu1  ;;  %v796_v22 = vmax.f32 %v740_v14, 0.0  ;;  %p1108_p0 = scmp.ne.s32.totalorder %s876_s26, %s1107_s7  ;;  %p1113_p2 = scmp.lt.s32.totalorder %s1111_s4, %s1107_s7 }
 0x1fa   :  { %v735_v21 = vadd.f32 %v734_v20, %v577_v7  ;;  %v794_v25 = vmax.f32 %v732_v17, 0.0 }
 0x1fb   :  { %v797_v23 = vmax.f32 %v743_v19, 0.0  ;;  %p1114_p3 = por %p1113_p2, %p1112_p1 }
 0x1fc   :  { %v795_v26 = vmax.f32 %v735_v21, 0.0 }
 0x1fd   :  { %v812_v27 = vpack.c.bf16 %v797_v23, %v796_v22  ;;  %p1115_p4 = pnand %p1114_p3, %p1108_p0 }
 0x1fe   :  { %v811_v29 = vpack.c.bf16 %v795_v26, %v794_v25  ;;  %v1025_v30 = vpop.f32.mrb[4].mxu1 }
 0x1ff   :  { %v756_v31 = vadd.f32 %v1025_v30, %v602_v12  ;;  %v747_v32 = vpop.f32.mrb[5].mxu1 }
 0x200   :  { %v748_v33 = vadd.f32 %v747_v32, %v592_v10  ;;  %v1026_v34 = vpop.f32.mrb[6].mxu1  ;;  %1036 = vmatpush3.bf16.msra.mxu1 %v811_v29 }
 0x201   :  { %v759_v35 = vadd.f32 %v1026_v34, %v607_v16  ;;  %v750_v36 = vpop.f32.mrb[7].mxu1  ;;  %1037 = vmatprep.subr.bf16.mxu1 %v1132_v5  ;;  %v800_v39 = vmax.f32 %v756_v31, 0.0  ;;  %v820_v16 = vstv %s1410_s8 }
 0x202   :  { %v751_v38 = vadd.f32 %v750_v36, %v597_v11  ;;  %v798_v42 = vmax.f32 %v748_v33, 0.0 }
 0x203   :  { %v801_v40 = vmax.f32 %v759_v35, 0.0 }
 0x204   :  { %v799_v43 = vmax.f32 %v751_v38, 0.0  ;;  %1038 = vmatpush3.bf16.msra.mxu1 %v812_v27 }
 0x205   :  { %v814_v44 = vpack.c.bf16 %v801_v40, %v800_v39  ;;  %1039 = vmatprep.subr.bf16.mxu1 %v1132_v5 }
 0x206   :  { %v813_v45 = vpack.c.bf16 %v799_v43, %v798_v42  ;;  %v1029_v46 = vpop.f32.mrb[8].mxu1 }
 0x207   :  { %v772_v47 = vadd.f32 %v1029_v46, %v622_v37  ;;  %v763_v48 = vpop.f32.mrb[9].mxu1 }
 0x208   :  { %v764_v50 = vadd.f32 %v763_v48, %v612_v24  ;;  %v1030_v51 = vpop.f32.mrb[10].mxu1  ;;  %1040 = vmatpush3.bf16.msra.mxu1 %v813_v45 }
 0x209   :  { %v775_v52 = vadd.f32 %v1030_v51, %v627_v41  ;;  %v766_v53 = vpop.f32.mrb[11].mxu1  ;;  %1041 = vmatprep.subr.bf16.mxu1 %v1132_v5  ;;  %v804_v56 = vmax.f32 %v772_v47, 0.0 }
 0x20a   :  { %v767_v55 = vadd.f32 %v766_v53, %v617_v28  ;;  %v802_v58 = vmax.f32 %v764_v50, 0.0 }
 0x20b   :  { %v805_v57 = vmax.f32 %v775_v52, 0.0 }
 0x20c   :  { %v803_v59 = vmax.f32 %v767_v55, 0.0  ;;  %1042 = vmatpush3.bf16.msra.mxu1 %v814_v44 }
 0x20d   :  { %v816_v60 = vpack.c.bf16 %v805_v57, %v804_v56  ;;  %1043 = vmatprep.subr.bf16.mxu1 %v1132_v5 }
 0x20e   :  { %v815_v62 = vpack.c.bf16 %v803_v59, %v802_v58  ;;  %v1033_v63 = vpop.f32.mrb[12].mxu1 }
 0x20f   :  { %v788_v0 = vadd.f32 %v1033_v63, %v642_v61  ;;  %v779_v1 = vpop.f32.mrb[13].mxu1 }
 0x210   :  { %v780_v3 = vadd.f32 %v779_v1, %v632_v49  ;;  %v1034_v4 = vpop.f32.mrb[14].mxu1  ;;  %1044 = vmatpush3.bf16.msra.mxu1 %v815_v62 }
 0x211   :  { %v791_v6 = vadd.f32 %v1034_v4, %v647_v2  ;;  %v782_v7 = vpop.f32.mrb[15].mxu1  ;;  %1045 = vmatprep.subr.bf16.mxu1 %v1132_v5  ;;  %v808_v9 = vmax.f32 %v788_v0, 0.0 }
 0x212   :  { %v783_v8 = vadd.f32 %v782_v7, %v637_v54  ;;  %v806_v11 = vmax.f32 %v780_v3, 0.0 }
 0x213   :  { %v809_v10 = vmax.f32 %v791_v6, 0.0 }
 0x214   :  { %v807_v12 = vmax.f32 %v783_v8, 0.0  ;;  %1046 = vmatpush3.bf16.msra.mxu1 %v816_v60 }
 0x215   :  { %v818_v13 = vpack.c.bf16 %v809_v10, %v808_v9  ;;  %1047 = vmatprep.subr.bf16.mxu1 %v1132_v5 }
 0x216   :  { %v817_v14 = vpack.c.bf16 %v807_v12, %v806_v11 }
 0x218   :  { %1048 = vmatpush3.bf16.msra.mxu1 %v817_v14 }
 0x219   :  { %1049 = vmatprep.subr.bf16.mxu1 %v1132_v5 }
 0x21c   :  { %1050 = vmatpush3.bf16.msra.mxu1 %v818_v13 }
 0x21f   :  { %1052 = vmatmul.mubr.bf16.vlgmr.msra.gmra.mrb[16].mxu1 %v810_v15 }
 0x2f2   :  { %v855_v17 = vpop.f32.mrb[16].mxu1 }
 0x2f3   :  { %v856_v18 = vadd.f32 %v855_v17, %v820_v16  ;;  %v1053_v19 = vpop.f32.mrb[17].mxu1 }
 0x2f4   :  { %v858_v20 = vpop.f32.mrb[18].mxu1 }
 0x2f5   :  { %v923_v21 = vmul.f32 -1.442695, %v856_v18  ;;  %v1054_v22 = vpop.f32.mrb[19].mxu1 }
 0x2f7   :  { %1103 = vpow2.f32 %v923_v21 }
 0x301   :  { %v1104_v23 = vpop.eup %1103 }
 0x302   :  { %v864_v24 = vadd.f32 1.0, %v1104_v23 }
 0x304   :  { %1105 = vrcp.f32 %v864_v24 }
 0x30e   :  { %v1106_v5 = vpop.eup %1105 }
 0x30f   :  { %868 = vst.msk [vmem:[#allocation3] sm:$0x1] %vm867_vm5, %v1106_v5 }
 0x310   :  { %1118 = shalt.err (!%p1115_p4)
}
 0x311   :  { %s1119_s28 = scalar_lea.hbm %s1411_s9, 16 }
 0x312   :  { %p1120_p5 = scmp.ne.s32.totalorder %s1411_s9, %s1119_s28  ;;  %p1123_p6 = scmp.lt.u32.totalorder %s1119_s28, %s1411_s9 }
 0x314   :  { %p1125_p7 = pnand %p1123_p6, %p1120_p5 }
 0x316   :  { %1128 = shalt.err (!%p1125_p7)
}
 0x317   :  { %878 = dma.vmem_to_hbm [thread:$0]  %s876_s26, 16, %s1411_s9, [#allocation4]  }
 0x318   :  { %1129 = dma.done.wait [#allocation4], 16  }
 0x319   :  { %1130 = vsyncadd [#allocation4], 4294967280 }
 0x31a   :  { %882 = vsyncpa [#allocation4], 1 }

</bundles_post_ra>
